<compile_context>
chip_gen: v5e
topology: v5e:2x2
jax: 0.10.0
libtpu: 0.0.40
codegen_flags: <defaults>
</compile_context>

<pallas_src>
import functools

import jax
import jax.numpy as jnp
from jax.experimental import pallas as pl
from jax.experimental.pallas import tpu as pltpu


def _joint_sampling_kernel(disc_ref, unif_ref, mean_ref, logvar_ref, noise_ref,
                           disc_out_ref, cont_out_ref, *, inv_temperature, eps):
    """All discrete reductions are over axis 0 (sublanes); lanes carry B*N_categ (dense).

    disc_ref / unif_ref       : (categ_N, M_pad) f32
    mean/logvar/noise refs    : (1, CL_pad) f32
    disc_out_ref              : (categ_N, M_pad) f32
    cont_out_ref              : (1, CL_pad) f32
    """
    # ---- discrete branch: gumbel-softmax of softmax(logits) ------------------
    x = disc_ref[...]                                       # logits, (C, M_pad)
    xs = x - jnp.max(x, axis=0, keepdims=True)
    # Fused log_softmax == log(softmax(x)); differs from torch's log(softmax(x)+eps) only
    # at the eps=1e-12 level and saves (C-1) logs per group (EUP is the binding unit).
    log_alpha = xs - jnp.log(jnp.sum(jnp.exp(xs), axis=0, keepdims=True))

    u = unif_ref[...]
    gumbel = -jnp.log(-jnp.log(u + eps) + eps)
    logit = (log_alpha + gumbel) * inv_temperature          # compile-time 1/T multiply

    e = jnp.exp(logit - jnp.max(logit, axis=0, keepdims=True))
    denom = jnp.sum(e, axis=0, keepdims=True)
    disc_out_ref[...] = e / denom                           # exact: rows must sum to 1

    # ---- continuous branch: gaussian reparameterization (lane-dense) ---------
    cont_out_ref[...] = (mean_ref[...]
                         + jnp.exp(0.5 * logvar_ref[...]) * noise_ref[...])


def _round_up(x, m):
    return ((x + m - 1) // m) * m


@functools.partial(
    jax.jit,
    static_argnames=("N_categ", "categ_N", "latent_dim", "eps", "temperature"))
def joint_sampling_forward(latent, key, *, N_categ, categ_N, latent_dim,
                           eps=1e-12, temperature=0.5):
    """Training-mode JointSampling.forward: returns (latent_sample, mean, logvar)."""
    latent = latent.astype(jnp.float32)          # keep f32 everywhere (v5e-safe)
    B = latent.shape[0]
    disc_len = N_categ * categ_N
    M = B * N_categ                              # number of independent categorical groups
    CL = B * latent_dim                          # flattened continuous length
    M_pad = _round_up(M, 128)                    # lane-dense width (review #4)
    CL_pad = _round_up(CL, 128)                  # lane-dense width (review #3)

    # Lane-dense relayout of the discrete logits: (B, disc_len) -> (M, categ_N) -> T -> pad.
    # Column j = b*N_categ + n carries the categ_N logits of group (b, n) along sublanes.
    disc_t = latent[:, :disc_len].reshape(M, categ_N).T
    disc_t = jnp.pad(disc_t, ((0, 0), (0, M_pad - M)))

    # De-interleave mean/logvar once (torch: .view(-1, L, 2).unbind(-1)); also returned.
    cont = latent[:, disc_len:].reshape(B, latent_dim, 2)
    mean, logvar = cont[..., 0], cont[..., 1]
    mean_flat = jnp.pad(mean.reshape(1, CL), ((0, 0), (0, CL_pad - CL)))
    logvar_flat = jnp.pad(logvar.reshape(1, CL), ((0, 0), (0, CL_pad - CL)))

    # Noise drawn directly in the kernel's lane-dense layouts (deterministic given `key`).
    k_u, k_n = jax.random.split(key)
    unif_t = jax.random.uniform(k_u, (categ_N, M_pad), dtype=jnp.float32)
    noise_flat = jax.random.normal(k_n, (1, CL_pad), dtype=jnp.float32)

    kernel = functools.partial(_joint_sampling_kernel,
                               inv_temperature=1.0 / temperature, eps=eps)
    vmem = pl.BlockSpec(memory_space=pltpu.MemorySpace.VMEM)
    disc_out, cont_out = pl.pallas_call(
        kernel,
        out_shape=(jax.ShapeDtypeStruct((categ_N, M_pad), jnp.float32),   # lane-dense
                   jax.ShapeDtypeStruct((1, CL_pad), jnp.float32)),       # lane-dense
        in_specs=[vmem, vmem, vmem, vmem, vmem],
        out_specs=(vmem, vmem),
    )(disc_t, unif_t, mean_flat, logvar_flat, noise_flat)

    # Layout plumbing back to the module's (B, disc_len + latent_dim) sample (tiny, XLA-side).
    disc_sample = disc_out[:, :M].T.reshape(B, disc_len)
    cont_sample = cont_out[0, :CL].reshape(B, latent_dim)
    latent_sample = jnp.concatenate([disc_sample, cont_sample], axis=1)
    return latent_sample, mean, logvar


if __name__ == "__main__":
    # Small shapes consistent with the module's forward.
    B = 2
    N_categ = 4
    categ_N = 8
    latent_dim = 16
    latent_size_in = N_categ * categ_N + latent_dim * 2   # 64

    key = jax.random.PRNGKey(0)
    k_in, k_sample = jax.random.split(key)
    latent = jax.random.normal(k_in, (B, latent_size_in), dtype=jnp.float32)

    latent_sample, mean, logvar = joint_sampling_forward(
        latent, k_sample,
        N_categ=N_categ, categ_N=categ_N, latent_dim=latent_dim,
        eps=1e-12, temperature=0.5)
    jax.block_until_ready((latent_sample, mean, logvar))

    disc_len = N_categ * categ_N
    # shapes match the PyTorch module's outputs
    assert latent_sample.shape == (B, disc_len + latent_dim)
    assert mean.shape == (B, latent_dim)
    assert logvar.shape == (B, latent_dim)
    # mean/logvar are the de-interleaved continuous parameters (view(-1, L, 2).unbind(-1))
    assert jnp.allclose(mean, latent[:, disc_len::2])
    assert jnp.allclose(logvar, latent[:, disc_len + 1::2])
    # each per-position gumbel-softmax row sums to ~1 (exact normalization in-kernel)
    row_sums = latent_sample[:, :disc_len].reshape(B, N_categ, categ_N).sum(-1)
    assert jnp.allclose(row_sums, 1.0, atol=1e-3)
    assert bool(jnp.all(jnp.isfinite(latent_sample)))

    print("KERNEL_OK")
</pallas_src>

<mosaic_0001>
module attributes {stable_mosaic.version = 11 : i64} {
  func.func @_joint_sampling_kernel(%arg0: memref<8x128xf32, #tpu.memory_space<vmem>>, %arg1: memref<8x128xf32, #tpu.memory_space<vmem>>, %arg2: memref<1x128xf32, #tpu.memory_space<vmem>>, %arg3: memref<1x128xf32, #tpu.memory_space<vmem>>, %arg4: memref<1x128xf32, #tpu.memory_space<vmem>>, %arg5: memref<8x128xf32, #tpu.memory_space<vmem>>, %arg6: memref<1x128xf32, #tpu.memory_space<vmem>>) attributes {dimension_semantics = [], scalar_prefetch = 0 : i64, scratch_operands = 0 : i64, tpu.core_type = #tpu.core_type<tc>} {
    %c0 = arith.constant 0 : index
    %c0_0 = arith.constant 0 : index
    %0 = vector.load %arg0[%c0, %c0_0] : memref<8x128xf32, #tpu.memory_space<vmem>>, vector<8x128xf32>
    %cst = arith.constant dense<0xFF800000> : vector<128xf32>
    %1 = vector.multi_reduction <maximumf>, %0, %cst [0] : vector<8x128xf32> to vector<128xf32>
    %2 = vector.shape_cast %1 : vector<128xf32> to vector<1x128xf32>
    %3 = vector.broadcast %2 : vector<1x128xf32> to vector<8x128xf32>
    %4 = arith.subf %0, %3 : vector<8x128xf32>
    %5 = math.exp %4 : vector<8x128xf32>
    %cst_1 = arith.constant dense<0.000000e+00> : vector<128xf32>
    %6 = vector.multi_reduction <add>, %5, %cst_1 [0] : vector<8x128xf32> to vector<128xf32>
    %7 = vector.shape_cast %6 : vector<128xf32> to vector<1x128xf32>
    %8 = math.log %7 : vector<1x128xf32>
    %9 = vector.broadcast %8 : vector<1x128xf32> to vector<8x128xf32>
    %10 = arith.subf %4, %9 : vector<8x128xf32>
    %c0_2 = arith.constant 0 : index
    %c0_3 = arith.constant 0 : index
    %11 = vector.load %arg1[%c0_2, %c0_3] : memref<8x128xf32, #tpu.memory_space<vmem>>, vector<8x128xf32>
    %cst_4 = arith.constant 9.99999996E-13 : f32
    %12 = vector.broadcast %cst_4 : f32 to vector<8x128xf32>
    %13 = arith.addf %11, %12 : vector<8x128xf32>
    %14 = math.log %13 : vector<8x128xf32>
    %cst_5 = arith.constant 0.000000e+00 : f32
    %15 = vector.broadcast %cst_5 : f32 to vector<8x128xf32>
    %16 = arith.subf %15, %14 : vector<8x128xf32>
    %cst_6 = arith.constant 9.99999996E-13 : f32
    %17 = vector.broadcast %cst_6 : f32 to vector<8x128xf32>
    %18 = arith.addf %16, %17 : vector<8x128xf32>
    %19 = math.log %18 : vector<8x128xf32>
    %cst_7 = arith.constant 0.000000e+00 : f32
    %20 = vector.broadcast %cst_7 : f32 to vector<8x128xf32>
    %21 = arith.subf %20, %19 : vector<8x128xf32>
    %22 = arith.addf %10, %21 : vector<8x128xf32>
    %cst_8 = arith.constant 2.000000e+00 : f32
    %23 = vector.broadcast %cst_8 : f32 to vector<8x128xf32>
    %24 = arith.mulf %22, %23 : vector<8x128xf32>
    %cst_9 = arith.constant dense<0xFF800000> : vector<128xf32>
    %25 = vector.multi_reduction <maximumf>, %24, %cst_9 [0] : vector<8x128xf32> to vector<128xf32>
    %26 = vector.shape_cast %25 : vector<128xf32> to vector<1x128xf32>
    %27 = vector.broadcast %26 : vector<1x128xf32> to vector<8x128xf32>
    %28 = arith.subf %24, %27 : vector<8x128xf32>
    %29 = math.exp %28 : vector<8x128xf32>
    %cst_10 = arith.constant dense<0.000000e+00> : vector<128xf32>
    %30 = vector.multi_reduction <add>, %29, %cst_10 [0] : vector<8x128xf32> to vector<128xf32>
    %31 = vector.shape_cast %30 : vector<128xf32> to vector<1x128xf32>
    %32 = vector.broadcast %31 : vector<1x128xf32> to vector<8x128xf32>
    %33 = arith.divf %29, %32 : vector<8x128xf32>
    %c0_11 = arith.constant 0 : index
    %c0_12 = arith.constant 0 : index
    %34 = vector.load %arg5[%c0_11, %c0_12] : memref<8x128xf32, #tpu.memory_space<vmem>>, vector<8x128xf32>
    tpu.vector_store %arg5[%c0_11, %c0_12], %33 {strides = array<i32>} : memref<8x128xf32, #tpu.memory_space<vmem>>, vector<8x128xf32>,
    %c0_13 = arith.constant 0 : index
    %c0_14 = arith.constant 0 : index
    %35 = vector.load %arg2[%c0_13, %c0_14] : memref<1x128xf32, #tpu.memory_space<vmem>>, vector<1x128xf32>
    %c0_15 = arith.constant 0 : index
    %c0_16 = arith.constant 0 : index
    %36 = vector.load %arg3[%c0_15, %c0_16] : memref<1x128xf32, #tpu.memory_space<vmem>>, vector<1x128xf32>
    %cst_17 = arith.constant 5.000000e-01 : f32
    %37 = vector.broadcast %cst_17 : f32 to vector<1x128xf32>
    %38 = arith.mulf %37, %36 : vector<1x128xf32>
    %39 = math.exp %38 : vector<1x128xf32>
    %c0_18 = arith.constant 0 : index
    %c0_19 = arith.constant 0 : index
    %40 = vector.load %arg4[%c0_18, %c0_19] : memref<1x128xf32, #tpu.memory_space<vmem>>, vector<1x128xf32>
    %41 = arith.mulf %39, %40 : vector<1x128xf32>
    %42 = arith.addf %35, %41 : vector<1x128xf32>
    %c0_20 = arith.constant 0 : index
    %c0_21 = arith.constant 0 : index
    %43 = vector.load %arg6[%c0_20, %c0_21] : memref<1x128xf32, #tpu.memory_space<vmem>>, vector<1x128xf32>
    tpu.vector_store %arg6[%c0_20, %c0_21], %42 {strides = array<i32>} : memref<1x128xf32, #tpu.memory_space<vmem>>, vector<1x128xf32>,
    return
  }
}

</mosaic_0001>

<bundles_post_ra>
// kernel: squeeze.21
= control target key start
LH: loop header
LB: loop body
LE: loop exit
PB: predicated region body
PF: predicated region fallthrough
CT: control target
= control target key end

     0   :  { %vm7_vm0 = vcmask 130048   ;;  %vm13_vm1 = vcmask 261248   ;;  %s39_s0 = inlined_call_operand.vmem [shape: f32[2,16], index: 0, kind: input, shape index: {}]   ;;  %s40_s1 = inlined_call_operand.vmem [shape: f32[1,32], index: 1, kind: output, shape index: {}]  }
   0x1   :  { %v4_v0 = vld [vmem:[%s39_s0] sm:$0x3]  ;;  %s22_s0 = smov 16  }
   0x2   :  { %5 = vst [vmem:[#allocation1] sm:$0x3] %v4_v0 }
   0x9   :  { %v10_v1 = vld [vmem:[#allocation1 + $0x1] sm:$0x1]   ;;  %v6_v2 = vld [vmem:[#allocation1] sm:$0x1]  }
   0xa   :  { %11 = vrot.lane.b32.xlu0 %v10_v1, %s22_s0  ;;  %8 = vst.msk [vmem:[#allocation0] sm:$0x1] %vm7_vm0, %v6_v2  }
  0x7c   :  { %v12_v3 = vpop.permute.xlu0 %11  }
  0x7d   :  { %14 = vst.msk [vmem:[#allocation0] sm:$0x1] %vm13_vm1, %v12_v3  }
  0x84   :  { %v17_v4 = vld [vmem:[#allocation0] sm:$0x1] }
  0x85   :  { %20 = vst [vmem:[%s40_s1] sm:$0x1] %v17_v4 }

// kernel: squeeze.25
= control target key start
LH: loop header
LB: loop body
LE: loop exit
PB: predicated region body
PF: predicated region fallthrough
CT: control target
= control target key end

     0   :  { %vm7_vm0 = vcmask 130048   ;;  %s39_s0 = inlined_call_operand.vmem [shape: f32[32], index: 0, kind: input, shape index: {}]   ;;  %s40_s1 = inlined_call_operand.vmem [shape: f32[2,16], index: 1, kind: output, shape index: {}]  }
   0x1   :  { %v4_v0 = vld [vmem:[%s39_s0] sm:$0x1]  ;;  %s22_s0 = smov 112  }
   0x2   :  { %5 = vst [vmem:[#allocation1] sm:$0x1] %v4_v0 }
   0x9   :  { %v9_v1 = vld [vmem:[#allocation1] sm:$0x1]  }
   0xa   :  { %v6_v2 = vld [vmem:[#allocation1] sm:$0x1]   ;;  %10 = vrot.lane.b32.xlu0 %v9_v1, %s22_s0 }
   0xb   :  { %8 = vst.msk [vmem:[#allocation0] sm:$0x1] %vm7_vm0, %v6_v2  }
  0x7c   :  { %v11_v3 = vpop.permute.xlu0 %10  }
  0x7d   :  { %14 = vst.msk [vmem:[#allocation0 + $0x1] sm:$0x1] %vm7_vm0, %v11_v3  }
  0x84   :  { %v17_v4 = vld [vmem:[#allocation0] sm:$0x3] }
  0x85   :  { %20 = vst [vmem:[%s40_s1] sm:$0x3] %v17_v4 }

// kernel: joint_sampling_forward.3
= control target key start
LH: loop header
LB: loop body
LE: loop exit
PB: predicated region body
PF: predicated region fallthrough
CT: control target
= control target key end

     0   :  { %s170_s0 = inlined_call_operand.vmem [shape: f32[8,128], index: 0, kind: input, shape index: {}]   ;;  %s171_s1 = inlined_call_operand.vmem [shape: f32[8,128], index: 1, kind: input, shape index: {}]   ;;  %s172_s3 = inlined_call_operand.vmem [shape: f32[1,128], index: 3, kind: input, shape index: {}]   ;;  %s173_s4 = inlined_call_operand.vmem [shape: f32[1,128], index: 4, kind: input, shape index: {}]   ;;  %s174_s2 = inlined_call_operand.vmem [shape: f32[1,128], index: 2, kind: input, shape index: {}]   ;;  %s175_s6 = inlined_call_operand.vmem [shape: f32[1,128], index: 6, kind: output, shape index: {1}]   ;;  %s176_s5 = inlined_call_operand.vmem [shape: f32[8,128], index: 5, kind: output, shape index: {0}]  }
   0x1   :  { %v22_v0 = vld [vmem:[%s170_s0] sm:$0xff] }
   0x2   :  { %v23_v1 = vrot.slane %v22_v0, 4  ;;  %v41_v2 = vld [vmem:[%s171_s1] sm:$0xff] }
   0x3   :  { %v42_v5 = vadd.f32 1e-12, %v41_v2  ;;  %v84_v34 = vld [vmem:[%s172_s3] sm:$0x1] }
   0x4   :  { %v24_v3 = vmax.f32 %v22_v0, %v23_v1  ;;  %v85_v35 = vmul.f32 0.5, %v84_v34  ;;  %v88_v42 = vld [vmem:[%s173_s4] sm:$0x1] }
   0x5   :  { %100 = vlog2.f32 %v42_v5  ;;  %v83_v44 = vld [vmem:[%s174_s2] sm:$0x1] }
   0x6   :  { %v25_v4 = vrot.slane %v24_v3, 2  ;;  %v86_v37 = vmul.f32 1.442695, %v85_v35 }
   0x8   :  { %v26_v6 = vmax.f32 %v24_v3, %v25_v4 }
   0xa   :  { %v27_v7 = vrot.slane %v26_v6, 1 }
   0xb   :  { %v101_v10 = vpop.eup %100 }
   0xc   :  { %v28_v8 = vmax.f32 %v26_v6, %v27_v7  ;;  %v44_v12 = vmul.f32 0.6931472, %v101_v10 }
   0xe   :  { %v29_v9 = vsub.f32 %v22_v0, %v28_v8  ;;  %v45_v13 = vsub.f32 0.0, %v44_v12 }
  0x10   :  { %v30_v11 = vmul.f32 1.442695, %v29_v9  ;;  %v46_v17 = vadd.f32 1e-12, %v45_v13 }
  0x12   :  { %102 = vpow2.f32 %v30_v11 }
  0x13   :  { %104 = vlog2.f32 %v46_v17 }
  0x18   :  { %v103_v14 = vpop.eup %102 }
  0x19   :  { %v32_v15 = vrot.slane %v103_v14, 4  ;;  %v105_v22 = vpop.eup %104 }
  0x1a   :  { %v48_v23 = vmul.f32 0.6931472, %v105_v22 }
  0x1b   :  { %v33_v16 = vadd.f32 %v103_v14, %v32_v15 }
  0x1c   :  { %v49_v26 = vsub.f32 0.0, %v48_v23 }
  0x1d   :  { %v34_v18 = vrot.slane %v33_v16, 2 }
  0x1f   :  { %v35_v19 = vadd.f32 %v34_v18, %v33_v16 }
  0x21   :  { %v36_v20 = vrot.slane %v35_v19, 1 }
  0x23   :  { %v37_v21 = vadd.f32 %v36_v20, %v35_v19 }
  0x25   :  { %106 = vlog2.f32 %v37_v21 }
  0x26   :  { %108 = vpow2.f32 %v86_v37 }
  0x2b   :  { %v107_v24 = vpop.eup %106 }
  0x2c   :  { %v39_v25 = vmul.f32 0.6931472, %v107_v24  ;;  %v109_v41 = vpop.eup %108 }
  0x2d   :  { %v89_v43 = vmul.f32 %v109_v41, %v88_v42 }
  0x2e   :  { %v40_v27 = vsub.f32 %v29_v9, %v39_v25 }
  0x2f   :  { %v90_v45 = vadd.f32 %v89_v43, %v83_v44 }
  0x30   :  { %v50_v28 = vadd.f32 %v49_v26, %v40_v27 }
  0x31   :  { %91 = vst [vmem:[%s175_s6] sm:$0x1] %v90_v45 }
  0x32   :  { %v51_v29 = vmul.f32 2.0, %v50_v28 }
  0x34   :  { %v52_v30 = vrot.slane %v51_v29, 4 }
  0x36   :  { %v53_v31 = vmax.f32 %v51_v29, %v52_v30 }
  0x38   :  { %v54_v32 = vrot.slane %v53_v31, 2 }
  0x3a   :  { %v55_v33 = vmax.f32 %v53_v31, %v54_v32 }
  0x3c   :  { %v56_v36 = vrot.slane %v55_v33, 1 }
  0x3e   :  { %v57_v38 = vmax.f32 %v55_v33, %v56_v36 }
  0x40   :  { %v58_v39 = vsub.f32 %v51_v29, %v57_v38 }
  0x42   :  { %v59_v40 = vmul.f32 1.442695, %v58_v39 }
  0x44   :  { %110 = vpow2.f32 %v59_v40 }
  0x4a   :  { %v111_v46 = vpop.eup %110 }
  0x4b   :  { %v61_v47 = vrot.slane %v111_v46, 4 }
  0x4d   :  { %v62_v48 = vadd.f32 %v111_v46, %v61_v47 }
  0x4f   :  { %v63_v49 = vrot.slane %v62_v48, 2 }
  0x51   :  { %v64_v50 = vadd.f32 %v63_v49, %v62_v48 }
  0x53   :  { %v65_v51 = vrot.slane %v64_v50, 1 }
  0x55   :  { %v66_v52 = vadd.f32 %v65_v51, %v64_v50 }
  0x57   :  { %112 = vrcp.f32 %v66_v52  ;;  %v78_v55 = vand.u32 2147483648, %v66_v52  ;;  %vm72_vm0 = vweird.f32 %v66_v52  ;;  %v76_v57 = vand.u32 2147483647, %v66_v52 }
  0x59   :  { %v79_v59 = vor.u32 1.1754944e-38, %v78_v55  ;;  %vm77_vm3 = vcmp.eq.f32.partialorder %v76_v57, 8.507059e+37 }
  0x5d   :  { %v113_v53 = vpop.eup %112 }
  0x5e   :  { %v68_v54 = vmul.f32 %v113_v53, %v66_v52  ;;  %vm73_vm1 = vweird.f32 %v113_v53 }
  0x5f   :  { %vm74_vm2 = vmor %vm72_vm0, %vm73_vm1 }
  0x60   :  { %v69_v56 = vsub.f32 1.0, %v68_v54 }
  0x62   :  { %v70_v58 = vmul.f32 %v113_v53, %v69_v56 }
  0x64   :  { %v71_v60 = vadd.f32 %v113_v53, %v70_v58 }
  0x66   :  { %v75_v61 = vsel %vm74_vm2, %v113_v53, %v71_v60 }
  0x67   :  { %v80_v62 = vsel %vm77_vm3, %v79_v59, %v75_v61 }
  0x68   :  { %v81_v63 = vmul.f32 %v111_v46, %v80_v62 }
  0x6a   :  { %82 = vst [vmem:[%s176_s5] sm:$0xff] %v81_v63 }

</bundles_post_ra>
